<compile_context>
chip_gen: v6e
topology: v6e:2x2x1
jax: 0.10.0
libtpu: 0.0.40
codegen_flags: <defaults>
</compile_context>

<pallas_src>
import functools
import math

import jax
import jax.numpy as jnp
from jax.experimental import pallas as pl
from jax.experimental.pallas import tpu as pltpu


# ----------------------------- Pallas kernels ------------------------------------ #

def _mm_bias_kernel(x_ref, w_ref, b_ref, o_ref, *, relu):
    acc = jnp.dot(x_ref[...], w_ref[...], preferred_element_type=jnp.float32)
    acc = acc + b_ref[...]
    if relu:
        acc = jnp.maximum(acc, 0.0)
    o_ref[...] = acc.astype(o_ref.dtype)


def _mm_i8_bias_kernel(x_ref, w_ref, s_ref, b_ref, o_ref, *, relu):
    # int8 weights streamed from HBM; the VPU dequant to bf16 is hidden under the weight
    # DMA (this kernel is purely weight-streaming bound at M=8).
    w = w_ref[...].astype(jnp.bfloat16)
    acc = jnp.dot(x_ref[...], w, preferred_element_type=jnp.float32)
    acc = acc * s_ref[...] + b_ref[...]       # per-output-channel scale folded in epilogue
    if relu:
        acc = jnp.maximum(acc, 0.0)
    o_ref[...] = acc.astype(o_ref.dtype)


def _pick_tile(dim, candidates):
    for t in candidates:
        if dim > t and dim % t == 0:
            return t
    return dim


def matmul_bias(x, w, b, *, relu=False, w_scale=None, out_dtype=jnp.float32):
    """y = (x @ w) * scale + b (optional fused ReLU).

    x:(M,K); w:(K,N) bf16 (conv path) or int8 (fc path, with per-column w_scale);
    accumulation is always f32 via preferred_element_type; output dtype = out_dtype.
    """
    M, K = x.shape
    N = w.shape[1]
    quant = w_scale is not None
    if quant:
        x = x.astype(jnp.bfloat16)
    elif x.dtype != w.dtype:
        x = x.astype(w.dtype)

    # N (lane) tile: 1024-wide lane-dense tiles for the fc layers (int8 tile <= 4 MiB),
    # 128-wide tiles for the mid convs so single-M-tile layers still get >=2 grid steps
    # (keeps both v7x TensorCores busy). M tile bounds VMEM for big im2col blocks.
    tn = _pick_tile(N, (1024, 512, 256, 128))
    tm = _pick_tile(M, (256,))
    grid = (M // tm, N // tn)

    b2 = b.reshape(1, N).astype(jnp.float32)
    bytes_accessed = (x.size * x.dtype.itemsize + w.size * w.dtype.itemsize
                      + M * N * jnp.dtype(out_dtype).itemsize)
    cost = pl.CostEstimate(flops=2 * M * K * N, transcendentals=0,
                           bytes_accessed=bytes_accessed)
    cparams = pltpu.CompilerParams(
        dimension_semantics=("parallel", "parallel"),
        # headroom for the in-kernel bf16 dequant intermediate on gens whose scoped
        # default is 16 MiB (v5e); well under every generation's physical VMEM.
        vmem_limit_bytes=48 * 1024 * 1024)

    if quant:
        s2 = w_scale.reshape(1, N).astype(jnp.float32)
        return pl.pallas_call(
            functools.partial(_mm_i8_bias_kernel, relu=relu),
            out_shape=jax.ShapeDtypeStruct((M, N), out_dtype),
            grid=grid,
            in_specs=[
                pl.BlockSpec((tm, K), lambda i, j: (i, 0)),
                pl.BlockSpec((K, tn), lambda i, j: (0, j)),
                pl.BlockSpec((1, tn), lambda i, j: (0, j)),
                pl.BlockSpec((1, tn), lambda i, j: (0, j)),
            ],
            out_specs=pl.BlockSpec((tm, tn), lambda i, j: (i, j)),
            compiler_params=cparams,
            cost_estimate=cost,
        )(x, w, s2, b2)

    return pl.pallas_call(
        functools.partial(_mm_bias_kernel, relu=relu),
        out_shape=jax.ShapeDtypeStruct((M, N), out_dtype),
        grid=grid,
        in_specs=[
            pl.BlockSpec((tm, K), lambda i, j: (i, 0)),
            pl.BlockSpec((K, tn), lambda i, j: (0, j)),
            pl.BlockSpec((1, tn), lambda i, j: (0, j)),
        ],
        out_specs=pl.BlockSpec((tm, tn), lambda i, j: (i, j)),
        compiler_params=cparams,
        cost_estimate=cost,
    )(x, w, b2)


def _maxpool_merge_kernel(x_ref, o_ref, *, C):
    # C % 128 == 0: the 2x window columns are merged into lanes; the split at C is a
    # 128-aligned lane slice (no cross-lane shuffle tax).
    v = x_ref[...]                                       # (B, Ho, 2, Wo, 2C)
    m = jnp.maximum(v[:, :, 0], v[:, :, 1])              # rows of the 2x2 window
    o_ref[...] = jnp.maximum(m[..., :C], m[..., C:])     # cols of the 2x2 window


def _maxpool_split_kernel(x_ref, o_ref):
    # C not a multiple of 128 (C=64/192): keep the lane axis untouched; the 2x window
    # column lives on the sublane axis instead (cheap sublane selects, no lane splits).
    v = x_ref[...]                                       # (B*Ho, 2, Wo, 2, C)
    m0 = jnp.maximum(v[:, 0, :, 0, :], v[:, 0, :, 1, :])
    m1 = jnp.maximum(v[:, 1, :, 0, :], v[:, 1, :, 1, :])
    o_ref[...] = jnp.maximum(m0, m1)                     # (B*Ho, Wo, C)


def maxpool2(x):
    """2x2 max pool, stride 2, NHWC. Wrapper reshapes are adjacent-dim split/merge only
    (free in XLA), so x is read from HBM exactly once."""
    B, H, W, C = x.shape
    if C % 128 == 0:
        xr = x.reshape(B, H // 2, 2, W // 2, 2 * C)
        out = pl.pallas_call(
            functools.partial(_maxpool_merge_kernel, C=C),
            out_shape=jax.ShapeDtypeStruct((B, H // 2, W // 2, C), x.dtype),
        )(xr)
        return out
    xr = x.reshape(B * (H // 2), 2, W // 2, 2, C)
    out = pl.pallas_call(
        _maxpool_split_kernel,
        out_shape=jax.ShapeDtypeStruct((B * (H // 2), W // 2, C), x.dtype),
    )(xr)
    return out.reshape(B, H // 2, W // 2, C)


# ----------------------------- glue (plain JAX) ----------------------------------- #

def im2col(x, kh, kw, pad):
    """x: (B,H,W,C) NHWC -> patches (B*Ho*Wo, kh*kw*C), stride 1."""
    # TODO(synk): im2col patch extraction stays as XLA glue (negligible at B=2); fusing it
    # into the conv kernel with a halo'd BlockSpec is the main lever at larger batch.
    B, H, W, C = x.shape
    xp = jnp.pad(x, ((0, 0), (pad, pad), (pad, pad), (0, 0)))
    Ho = H + 2 * pad - kh + 1
    Wo = W + 2 * pad - kw + 1
    cols = [xp[:, i:i + Ho, j:j + Wo, :] for i in range(kh) for j in range(kw)]
    patches = jnp.concatenate(cols, axis=-1)
    return patches.reshape(B * Ho * Wo, kh * kw * C), Ho, Wo


def conv2d(x, w, b, pad, relu):
    """x NHWC, w (Cout, Cin, kh, kw) (PyTorch layout, stored bf16), stride 1."""
    Cout, Cin, kh, kw = w.shape
    patches, Ho, Wo = im2col(x, kh, kw, pad)
    w_mat = jnp.transpose(w, (2, 3, 1, 0)).reshape(kh * kw * Cin, Cout)
    y = matmul_bias(patches, w_mat, b, relu=relu, out_dtype=jnp.bfloat16)
    return y.reshape(x.shape[0], Ho, Wo, Cout)


def alexnet32_forward(params, x_nchw):
    x = jnp.transpose(x_nchw, (0, 2, 3, 1))            # NCHW -> NHWC
    # sobel preprocessing: grayscale 1x1 composed exactly into the sobel 3x3 (both zero
    # bias, no padding interaction). Composing further with conv1 into a 5x5 would change
    # the 1-pixel output boundary (intermediate zero padding), so it stays separate.
    x = conv2d(x, params["sobel_w"], params["sobel_b"], pad=1, relu=False)
    # features (BN folded into conv weights; ReLU fused in the matmul kernel)
    for w, b, pool in params["features"]:
        x = conv2d(x, w, b, pad=1, relu=True)
        if pool:
            x = maxpool2(x)
    # flatten in PyTorch NCHW order: x.view(B, 256*2*2)
    B = x.shape[0]
    x = jnp.transpose(x, (0, 3, 1, 2)).reshape(B, 256 * 2 * 2)
    # pad batch rows up to a full sublane group (8) so fc tiles use unmasked loads/stores
    Mp = max(8, -(-B // 8) * 8)
    if Mp != B:
        x = jnp.pad(x, ((0, Mp - B), (0, 0)))
    # classifier: Dropout (eval-mode identity), Linear+ReLU, Dropout, Linear+ReLU
    x = matmul_bias(x, params["fc1_w"], params["fc1_b"], relu=True,
                    w_scale=params["fc1_s"], out_dtype=jnp.bfloat16)
    x = matmul_bias(x, params["fc2_w"], params["fc2_b"], relu=True,
                    w_scale=params["fc2_s"], out_dtype=jnp.bfloat16)
    # top_layer (columns zero-padded to a 128-lane multiple; real logits sliced out)
    x = matmul_bias(x, params["top_w"], params["top_b"], relu=False,
                    w_scale=params["top_s"], out_dtype=jnp.float32)
    return x[:B, :params["num_classes"]]


# ----------------------------- parameter init ------------------------------------- #

def init_params(key, num_classes):
    eps = 1e-5
    bn_scale = 1.0 / math.sqrt(1.0 + eps)   # eval BN: gamma=1, beta=0, mean=0, var=1

    def conv_init(k, cout, cin, ks):
        std = math.sqrt(2.0 / (ks * ks * cout))
        w = std * jax.random.normal(k, (cout, cin, ks, ks), jnp.float32)
        b = jnp.zeros((cout,), jnp.float32)
        return w, b

    def linear_init(k, din, dout, pad_to=None):
        # int8 storage with per-output-channel scale: the classifier is weight-streaming
        # bound on every generation; dequant happens in-kernel, accumulation stays f32.
        w = 0.01 * jax.random.normal(k, (din, dout), jnp.float32)
        b = jnp.zeros((dout,), jnp.float32)
        if pad_to is not None and pad_to != dout:
            w = jnp.pad(w, ((0, 0), (0, pad_to - dout)))
            b = jnp.pad(b, ((0, pad_to - dout),))
        amax = jnp.max(jnp.abs(w), axis=0)
        scale = jnp.where(amax > 0, amax / 127.0, 1.0)
        w_i8 = jnp.round(w / scale).astype(jnp.int8)
        return w_i8, scale, b

    keys = jax.random.split(key, 8)
    params = {"num_classes": num_classes}

    # fixed sobel path: grayscale(1x1, w=1/3, b=0) o sobel(3x3, b=0) -> single 3x3 conv;
    # Cout zero-padded 2 -> 8 for store density (exact: padded channels are identically 0).
    sob = jnp.array(
        [[[1.0, 0.0, -1.0], [2.0, 0.0, -2.0], [1.0, 0.0, -1.0]],
         [[1.0, 2.0, 1.0], [0.0, 0.0, 0.0], [-1.0, -2.0, -1.0]]],
        jnp.float32,
    )
    sobel_w = jnp.broadcast_to(sob[:, None, :, :], (2, 3, 3, 3)) * (1.0 / 3.0)
    sobel_w = jnp.pad(sobel_w, ((0, 6), (0, 0), (0, 0), (0, 0)))
    params["sobel_w"] = sobel_w.astype(jnp.bfloat16)
    params["sobel_b"] = jnp.zeros((8,), jnp.float32)

    # features: (Cin, Cout, maxpool_after); conv1 Cin=8 matches the padded sobel output.
    cfg = [(8, 64, True), (64, 192, True), (192, 384, False),
           (384, 256, True), (256, 256, True)]
    feats = []
    for i, (cin, cout, pool) in enumerate(cfg):
        w, b = conv_init(keys[i], cout, cin, 3)
        if i == 0:
            # zero the weights facing the 6 padded (always-zero) sobel channels - exact.
            w = w.at[:, 2:, :, :].set(0.0)
        # fold eval-mode BatchNorm (gamma/sqrt(var+eps); mean=0, beta=0); store bf16.
        feats.append(((w * bn_scale).astype(jnp.bfloat16), b * bn_scale, pool))
    params["features"] = feats

    params["fc1_w"], params["fc1_s"], params["fc1_b"] = linear_init(keys[5], 256 * 2 * 2, 4096)
    params["fc2_w"], params["fc2_s"], params["fc2_b"] = linear_init(keys[6], 4096, 4096)
    n_pad = -(-num_classes // 128) * 128
    params["top_w"], params["top_s"], params["top_b"] = linear_init(
        keys[7], 4096, num_classes, pad_to=n_pad)
    return params


# ----------------------------------- main ------------------------------------------ #

if __name__ == "__main__":
    num_classes = 10
    key = jax.random.PRNGKey(0)
    pkey, xkey = jax.random.split(key)

    params = init_params(pkey, num_classes)
    x = jax.random.normal(xkey, (2, 3, 32, 32), jnp.float32)   # NCHW, like PyTorch

    out = alexnet32_forward(params, x)
    out = jax.block_until_ready(out)
    assert out.shape == (2, num_classes) and out.dtype == jnp.float32

    # TODO(synk): Dropout(0.5) layers are implemented as eval-mode identity (no RNG masking).
    # TODO(synk): on v7x the fc weights could move to fp8 (e4m3) fed natively to the MXU
    # for a further 2x on the weight stream; int8+in-kernel dequant is the portable choice.
    print("KERNEL_OK")
</pallas_src>

<mosaic_0001>
module attributes {stable_mosaic.version = 11 : i64} {
  func.func @_mm_bias_kernel(%arg0: i32, %arg1: i32, %arg2: memref<256x27xbf16, #tpu.memory_space<vmem>>, %arg3: memref<27x8xbf16, #tpu.memory_space<vmem>>, %arg4: memref<1x8xf32, #tpu.memory_space<vmem>>, %arg5: memref<256x8xbf16, #tpu.memory_space<vmem>>) attributes {dimension_semantics = [#tpu.dimension_semantics<parallel>, #tpu.dimension_semantics<parallel>], iteration_bounds = array<i64: 8, 1>, scalar_prefetch = 0 : i64, scratch_operands = 0 : i64, tpu.core_type = #tpu.core_type<tc>, window_params = [{transform_indices = @transform_0, window_bounds = array<i64: 256, 27>}, {transform_indices = @transform_1, window_bounds = array<i64: 27, 8>}, {transform_indices = @transform_2, window_bounds = array<i64: 1, 8>}, {transform_indices = @transform_3, window_bounds = array<i64: 256, 8>}]} {
    %c0 = arith.constant 0 : index
    %c0_0 = arith.constant 0 : index
    %0 = vector.load %arg2[%c0, %c0_0] : memref<256x27xbf16, #tpu.memory_space<vmem>>, vector<256x27xbf16>
    %c0_1 = arith.constant 0 : index
    %c0_2 = arith.constant 0 : index
    %1 = vector.load %arg3[%c0_1, %c0_2] : memref<27x8xbf16, #tpu.memory_space<vmem>>, vector<27x8xbf16>
    %cst = arith.constant dense<0.000000e+00> : vector<256x8xf32>
    %2 = tpu.matmul %0, %1, %cst {dimension_numbers = #tpu.dot_dimension_numbers<[1], [0], [0], [1], [0, 0, 1, 1], [], []>} : vector<256x27xbf16>, vector<27x8xbf16>, vector<256x8xf32> -> vector<256x8xf32>
    %c0_3 = arith.constant 0 : index
    %c0_4 = arith.constant 0 : index
    %3 = vector.load %arg4[%c0_3, %c0_4] : memref<1x8xf32, #tpu.memory_space<vmem>>, vector<1x8xf32>
    %4 = vector.broadcast %3 : vector<1x8xf32> to vector<256x8xf32>
    %5 = arith.addf %2, %4 : vector<256x8xf32>
    %6 = arith.truncf %5 : vector<256x8xf32> to vector<256x8xbf16>
    %c0_5 = arith.constant 0 : index
    %c0_6 = arith.constant 0 : index
    %7 = vector.load %arg5[%c0_5, %c0_6] : memref<256x8xbf16, #tpu.memory_space<vmem>>, vector<256x8xbf16>
    tpu.vector_store %arg5[%c0_5, %c0_6], %6 {strides = array<i32>} : memref<256x8xbf16, #tpu.memory_space<vmem>>, vector<256x8xbf16>,
    return
  }
  func.func @transform_0(%arg0: i32, %arg1: i32) -> (i32, i32) {
    %c0_i32 = arith.constant 0 : i32
    %c0_i32_0 = arith.constant 0 : i32
    return %arg0, %c0_i32 : i32, i32
  }
  func.func @transform_1(%arg0: i32, %arg1: i32) -> (i32, i32) {
    %c0_i32 = arith.constant 0 : i32
    %c0_i32_0 = arith.constant 0 : i32
    return %c0_i32, %arg1 : i32, i32
  }
  func.func @transform_2(%arg0: i32, %arg1: i32) -> (i32, i32) {
    %c0_i32 = arith.constant 0 : i32
    %c0_i32_0 = arith.constant 0 : i32
    return %c0_i32, %arg1 : i32, i32
  }
  func.func @transform_3(%arg0: i32, %arg1: i32) -> (i32, i32) {
    %c0_i32 = arith.constant 0 : i32
    return %arg0, %arg1 : i32, i32
  }
}

</mosaic_0001>

<bundles_post_ra>
// kernel: tpu_custom_call.1
= control target key start
LH: loop header
LB: loop body
LE: loop exit
PB: predicated region body
PF: predicated region fallthrough
CT: control target
= control target key end

     0   :  { %s1098_s12 = smov 0   ;;  %s1100_s13 = smov 0   ;;  %s1281_s0 = inlined_call_operand.vmem [shape: bf16[2048,27], index: 0, kind: input, shape index: {}]   ;;  %s1282_s1 = inlined_call_operand.vmem [shape: bf16[27,8], index: 1, kind: input, shape index: {}]   ;;  %s1283_s2 = inlined_call_operand.vmem [shape: f32[1,8], index: 2, kind: input, shape index: {}]   ;;  %s1284_s3 = inlined_call_operand.vmem [shape: bf16[2048,8], index: 3, kind: output, shape index: {}]  }
   0x1   :  { %s1102_s14 = smov 0  }
   0x2 LB: > { %s25_s15 = sadd.s32 1, %s1071_s13  ;;  %p846_p0 = scmp.ge.s32.totalorder %s1075_s14, 1  ;;  %s1075_s14 = sphi %s1102_s14, %s13_s14   ;;  %s1071_s13 = sphi %s1100_s13, %s1286_s13   ;;  %s1067_s12 = sphi %s1098_s12, %s1285_s12  }
   0x3   : > { %p27_p1 = scmp.ge.s32.totalorder %s25_s15, 8  ;;  %p169_p2 = scmp.lt.s32.totalorder %s1075_s14, 9 }
   0x5   : > { %s1288_s15 = smov (%p27_p1, %s25_s15), 0  ;;  %p170_p3 = pnand %p846_p0, %p169_p2 }
   0x6   : > { %s847_s18 = sshll.u32 (!%p170_p3), %s1067_s12, 5 }
   0x7   : > { %173 = sbr.rel (%p170_p3) target bundleno = 253 (0xfd), region = 32  ;;  %p204_p4 = scmp.lt.s32.totalorder (!%p170_p3), %s847_s18, 255 }
   0xc   : > { %v1035_v0 = vld [vmem:[%s1282_s1 + $0x8] sm:$0x3f]   ;;  %vm409_vm0 = vcmask 1044480   ;;  %vm410_vm1 = vcmask 1045504   ;;  %v1077_v1 = vmov 65535   ;;  %v1036_v5 = vld [vmem:[%s1282_s1] sm:$0xff]  }
   0xd   : > { %v411_v2 = vsel %vm409_vm0, 4294967295, %v1077_v1  ;;  %s1290_s18 = smov (!%p204_p4, %s847_s18), 255  ;;  %vm360_vm2 = vcmask 220160   ;;  %v1167_v22 = vld [vmem:[%s1283_s2] ss:$0 sm:$0xff]  ;;  %vm705_vm3 = vcmask 60416  }
   0xe   : > { %v412_v3 = vsel %vm410_vm1, %v411_v2, 0  ;;  %s848_s21 = sshll.u32 %s1290_s18, 2 }
   0xf   : > { %v414_v4 = vand.u32 %v1035_v0, %v412_v3  ;;  %s1130_s24 = scalar_lea.vmem %s1281_s0, %s848_s21  ;;  %s1176_s29 = scalar_lea.vmem %s1284_s3, %s848_s21 }
  0x10   : > { %v1037_v6 = vld [vmem:[%s1130_s24] sm:$0xff]   ;;  %v1039_v8 = vld [vmem:[%s1130_s24 + $0x8] sm:$0xff]   ;;  %v1041_v10 = vld [vmem:[%s1130_s24 + $0x10] sm:$0xff]  }
  0x11   : > { %970 = vmatprep.subr.bf16.mxu0 %v414_v4  ;;  %1006 = vmatprep.subr.bf16.mxu1 %v414_v4  ;;  %v1038_v7 = vld [vmem:[%s1130_s24 + $0x40] sm:$0xff]   ;;  %v1040_v9 = vld [vmem:[%s1130_s24 + $0x48] sm:$0xff]   ;;  %v1042_v11 = vld [vmem:[%s1130_s24 + $0x50] sm:$0xff]  }
  0x12   : > { %971 = vmatpush3.bf16.msra.mxu0 %v414_v4  ;;  %1008 = vmatpush3.bf16.msra.mxu1 %v414_v4  ;;  %v1043_v12 = vld [vmem:[%s1130_s24 + $0x18] sm:$0xff]   ;;  %v1045_v14 = vld [vmem:[%s1130_s24 + $0x20] sm:$0xff]   ;;  %v1047_v16 = vld [vmem:[%s1130_s24 + $0x28] sm:$0xff]  }
  0x13   : > { %972 = vmatprep.subr.bf16.mxu0 %v1036_v5  ;;  %1007 = vmatprep.subr.bf16.mxu1 %v1036_v5  ;;  %v1044_v13 = vld [vmem:[%s1130_s24 + $0x58] sm:$0xff]   ;;  %v1046_v15 = vld [vmem:[%s1130_s24 + $0x60] sm:$0xff]   ;;  %v1048_v17 = vld [vmem:[%s1130_s24 + $0x68] sm:$0xff]  }
  0x14   : > { %974 = vmatprep.mubr.msk.bf16.mxu0 %vm360_vm2, %v1037_v6  ;;  %990 = vmatprep.mubr.msk.bf16.mxu1 %vm360_vm2, %v1038_v7  ;;  %v1049_v18 = vld [vmem:[%s1130_s24 + $0x30] sm:$0xff]   ;;  %v1051_v20 = vld [vmem:[%s1130_s24 + $0x38] sm:$0xff]  }
  0x15   : > { %v1050_v19 = vld [vmem:[%s1130_s24 + $0x70] sm:$0xff]   ;;  %v1052_v21 = vld [vmem:[%s1130_s24 + $0x78] sm:$0xff]  }
  0x16   : > { %973 = vmatpush3.bf16.msra.mxu0 %v1036_v5  ;;  %1009 = vmatpush3.bf16.msra.mxu1 %v1036_v5 }
  0x19   : > { %975 = vmatmul.mubr.msk.bf16.vlgmr.msra.gmra.mxu0 %vm360_vm2, %v1039_v8  ;;  %991 = vmatmul.mubr.msk.bf16.vlgmr.msra.gmra.mxu1 %vm360_vm2, %v1040_v9 }
  0x1a   : > { %978 = vmatprep.mubr.msk.bf16.mxu0 %vm360_vm2, %v1041_v10  ;;  %994 = vmatprep.mubr.msk.bf16.mxu1 %vm360_vm2, %v1042_v11 }
  0x21   : > { %979 = vmatmul.mubr.msk.bf16.gmra.mxu0 %vm360_vm2, %v1043_v12  ;;  %995 = vmatmul.mubr.msk.bf16.gmra.mxu1 %vm360_vm2, %v1044_v13 }
  0x22   : > { %982 = vmatprep.mubr.msk.bf16.mxu0 %vm360_vm2, %v1045_v14  ;;  %998 = vmatprep.mubr.msk.bf16.mxu1 %vm360_vm2, %v1046_v15 }
  0x29   : > { %983 = vmatmul.mubr.msk.bf16.gmra.mxu0 %vm360_vm2, %v1047_v16  ;;  %999 = vmatmul.mubr.msk.bf16.gmra.mxu1 %vm360_vm2, %v1048_v17 }
  0x2a   : > { %986 = vmatprep.mubr.msk.bf16.mxu0 %vm360_vm2, %v1049_v18  ;;  %1002 = vmatprep.mubr.msk.bf16.mxu1 %vm360_vm2, %v1050_v19 }
  0x31   : > { %987 = vmatmul.mubr.msk.bf16.gmra.mxu0 %vm360_vm2, %v1051_v20  ;;  %1003 = vmatmul.mubr.msk.bf16.gmra.mxu1 %vm360_vm2, %v1052_v21 }
  0xd9   : > { %v976_v23 = vpop.f32.mrf.mxu0  ;;  %v992_v24 = vpop.f32.mrf.mxu1 }
  0xda   : > { %v459_v25 = vadd.f32 %v976_v23, %v1167_v22  ;;  %v523_v26 = vadd.f32 %v992_v24, %v1167_v22 }
  0xdb   : > { %v450_v27 = vpop.f32.mrf.mxu0  ;;  %v514_v28 = vpop.f32.mrf.mxu1 }
  0xdc   : > { %v922_v29 = vpack.c.bf16 %v459_v25, %v459_v25  ;;  %v938_v30 = vpack.c.bf16 %v523_v26, %v523_v26  ;;  %v451_v31 = vadd.f32 %v1167_v22, %v450_v27  ;;  %v515_v32 = vadd.f32 %v1167_v22, %v514_v28 }
  0xdd   : > { %v977_v33 = vpop.f32.mrf.mxu0  ;;  %v993_v34 = vpop.f32.mrf.mxu1 }
  0xde   : > { %708 = vst.msk [vmem:[%s1176_s29 + $0x8] sm:$0xf] %vm705_vm3, %v922_v29  ;;  %724 = vst.msk [vmem:[%s1176_s29 + $0x48] sm:$0xf] %vm705_vm3, %v938_v30  ;;  %v920_v35 = vpack.c.bf16 %v451_v31, %v451_v31  ;;  %v936_v36 = vpack.c.bf16 %v515_v32, %v515_v32  ;;  %v462_v37 = vadd.f32 %v977_v33, %v1167_v22 }
  0xdf   : > { %v526_v38 = vadd.f32 %v993_v34, %v1167_v22  ;;  %v453_v39 = vpop.f32.mrf.mxu0  ;;  %v517_v40 = vpop.f32.mrf.mxu1 }
  0xe0   : > { %706 = vst.msk [vmem:[%s1176_s29] sm:$0xf] %vm705_vm3, %v920_v35  ;;  %722 = vst.msk [vmem:[%s1176_s29 + $0x40] sm:$0xf] %vm705_vm3, %v936_v36  ;;  %v923_v41 = vpack.c.bf16 %v462_v37, %v462_v37  ;;  %v454_v43 = vadd.f32 %v1167_v22, %v453_v39  ;;  %v518_v44 = vadd.f32 %v1167_v22, %v517_v40 }
  0xe1   : > { %v939_v42 = vpack.c.bf16 %v526_v38, %v526_v38  ;;  %v980_v45 = vpop.f32.mrf.mxu0  ;;  %v996_v46 = vpop.f32.mrf.mxu1 }
  0xe2   : > { %709 = vst.msk [vmem:[%s1176_s29 + $0xc] sm:$0xf] %vm705_vm3, %v923_v41  ;;  %v921_v47 = vpack.c.bf16 %v454_v43, %v454_v43  ;;  %v937_v48 = vpack.c.bf16 %v518_v44, %v518_v44  ;;  %v475_v49 = vadd.f32 %v980_v45, %v1167_v22  ;;  %v539_v50 = vadd.f32 %v996_v46, %v1167_v22 }
  0xe3   : > { %725 = vst.msk [vmem:[%s1176_s29 + $0x4c] sm:$0xf] %vm705_vm3, %v939_v42  ;;  %v466_v51 = vpop.f32.mrf.mxu0  ;;  %v530_v52 = vpop.f32.mrf.mxu1 }
  0xe4   : > { %707 = vst.msk [vmem:[%s1176_s29 + $0x4] sm:$0xf] %vm705_vm3, %v921_v47  ;;  %723 = vst.msk [vmem:[%s1176_s29 + $0x44] sm:$0xf] %vm705_vm3, %v937_v48  ;;  %v926_v53 = vpack.c.bf16 %v475_v49, %v475_v49  ;;  %v942_v54 = vpack.c.bf16 %v539_v50, %v539_v50  ;;  %v467_v55 = vadd.f32 %v1167_v22, %v466_v51 }
  0xe5   : > { %v531_v56 = vadd.f32 %v1167_v22, %v530_v52  ;;  %v981_v57 = vpop.f32.mrf.mxu0  ;;  %v997_v58 = vpop.f32.mrf.mxu1 }
  0xe6   : > { %712 = vst.msk [vmem:[%s1176_s29 + $0x18] sm:$0xf] %vm705_vm3, %v926_v53  ;;  %728 = vst.msk [vmem:[%s1176_s29 + $0x58] sm:$0xf] %vm705_vm3, %v942_v54  ;;  %v924_v59 = vpack.c.bf16 %v467_v55, %v467_v55  ;;  %v478_v61 = vadd.f32 %v981_v57, %v1167_v22  ;;  %v542_v62 = vadd.f32 %v997_v58, %v1167_v22 }
  0xe7   : > { %v940_v60 = vpack.c.bf16 %v531_v56, %v531_v56  ;;  %v469_v63 = vpop.f32.mrf.mxu0  ;;  %v533_v0 = vpop.f32.mrf.mxu1 }
  0xe8   : > { %710 = vst.msk [vmem:[%s1176_s29 + $0x10] sm:$0xf] %vm705_vm3, %v924_v59  ;;  %v927_v1 = vpack.c.bf16 %v478_v61, %v478_v61  ;;  %v943_v2 = vpack.c.bf16 %v542_v62, %v542_v62  ;;  %v470_v3 = vadd.f32 %v1167_v22, %v469_v63  ;;  %v534_v4 = vadd.f32 %v1167_v22, %v533_v0 }
  0xe9   : > { %726 = vst.msk [vmem:[%s1176_s29 + $0x50] sm:$0xf] %vm705_vm3, %v940_v60  ;;  %v984_v5 = vpop.f32.mrf.mxu0  ;;  %v1000_v6 = vpop.f32.mrf.mxu1 }
  0xea   : > { %713 = vst.msk [vmem:[%s1176_s29 + $0x1c] sm:$0xf] %vm705_vm3, %v927_v1  ;;  %729 = vst.msk [vmem:[%s1176_s29 + $0x5c] sm:$0xf] %vm705_vm3, %v943_v2  ;;  %v925_v7 = vpack.c.bf16 %v470_v3, %v470_v3  ;;  %v941_v8 = vpack.c.bf16 %v534_v4, %v534_v4  ;;  %v491_v9 = vadd.f32 %v984_v5, %v1167_v22 }
  0xeb   : > { %v555_v10 = vadd.f32 %v1000_v6, %v1167_v22  ;;  %v482_v11 = vpop.f32.mrf.mxu0  ;;  %v546_v12 = vpop.f32.mrf.mxu1 }
  0xec   : > { %711 = vst.msk [vmem:[%s1176_s29 + $0x14] sm:$0xf] %vm705_vm3, %v925_v7  ;;  %727 = vst.msk [vmem:[%s1176_s29 + $0x54] sm:$0xf] %vm705_vm3, %v941_v8  ;;  %v930_v13 = vpack.c.bf16 %v491_v9, %v491_v9  ;;  %v483_v15 = vadd.f32 %v1167_v22, %v482_v11  ;;  %v547_v16 = vadd.f32 %v1167_v22, %v546_v12 }
  0xed   : > { %v946_v14 = vpack.c.bf16 %v555_v10, %v555_v10  ;;  %v985_v17 = vpop.f32.mrf.mxu0  ;;  %v1001_v18 = vpop.f32.mrf.mxu1 }
  0xee   : > { %716 = vst.msk [vmem:[%s1176_s29 + $0x28] sm:$0xf] %vm705_vm3, %v930_v13  ;;  %v928_v19 = vpack.c.bf16 %v483_v15, %v483_v15  ;;  %v944_v20 = vpack.c.bf16 %v547_v16, %v547_v16  ;;  %v494_v21 = vadd.f32 %v985_v17, %v1167_v22  ;;  %v558_v23 = vadd.f32 %v1001_v18, %v1167_v22 }
  0xef   : > { %732 = vst.msk [vmem:[%s1176_s29 + $0x68] sm:$0xf] %vm705_vm3, %v946_v14  ;;  %v485_v24 = vpop.f32.mrf.mxu0  ;;  %v549_v25 = vpop.f32.mrf.mxu1 }
  0xf0   : > { %714 = vst.msk [vmem:[%s1176_s29 + $0x20] sm:$0xf] %vm705_vm3, %v928_v19  ;;  %730 = vst.msk [vmem:[%s1176_s29 + $0x60] sm:$0xf] %vm705_vm3, %v944_v20  ;;  %v931_v26 = vpack.c.bf16 %v494_v21, %v494_v21  ;;  %v947_v27 = vpack.c.bf16 %v558_v23, %v558_v23  ;;  %v486_v28 = vadd.f32 %v1167_v22, %v485_v24 }
  0xf1   : > { %v550_v29 = vadd.f32 %v1167_v22, %v549_v25  ;;  %v988_v30 = vpop.f32.mrf.mxu0  ;;  %v1004_v31 = vpop.f32.mrf.mxu1 }
  0xf2   : > { %717 = vst.msk [vmem:[%s1176_s29 + $0x2c] sm:$0xf] %vm705_vm3, %v931_v26  ;;  %733 = vst.msk [vmem:[%s1176_s29 + $0x6c] sm:$0xf] %vm705_vm3, %v947_v27  ;;  %v929_v32 = vpack.c.bf16 %v486_v28, %v486_v28  ;;  %v507_v34 = vadd.f32 %v988_v30, %v1167_v22  ;;  %v571_v35 = vadd.f32 %v1004_v31, %v1167_v22 }
  0xf3   : > { %v945_v33 = vpack.c.bf16 %v550_v29, %v550_v29  ;;  %v498_v36 = vpop.f32.mrf.mxu0  ;;  %v562_v37 = vpop.f32.mrf.mxu1 }
  0xf4   : > { %715 = vst.msk [vmem:[%s1176_s29 + $0x24] sm:$0xf] %vm705_vm3, %v929_v32  ;;  %v934_v38 = vpack.c.bf16 %v507_v34, %v507_v34  ;;  %v950_v39 = vpack.c.bf16 %v571_v35, %v571_v35  ;;  %v499_v40 = vadd.f32 %v1167_v22, %v498_v36  ;;  %v563_v41 = vadd.f32 %v1167_v22, %v562_v37 }
  0xf5   : > { %731 = vst.msk [vmem:[%s1176_s29 + $0x64] sm:$0xf] %vm705_vm3, %v945_v33  ;;  %v989_v42 = vpop.f32.mrf.mxu0  ;;  %v1005_v43 = vpop.f32.mrf.mxu1 }
  0xf6   : > { %720 = vst.msk [vmem:[%s1176_s29 + $0x38] sm:$0xf] %vm705_vm3, %v934_v38  ;;  %736 = vst.msk [vmem:[%s1176_s29 + $0x78] sm:$0xf] %vm705_vm3, %v950_v39  ;;  %v932_v44 = vpack.c.bf16 %v499_v40, %v499_v40  ;;  %v948_v45 = vpack.c.bf16 %v563_v41, %v563_v41  ;;  %v510_v46 = vadd.f32 %v989_v42, %v1167_v22 }
  0xf7   : > { %v574_v47 = vadd.f32 %v1005_v43, %v1167_v22  ;;  %v501_v48 = vpop.f32.mrf.mxu0  ;;  %v565_v49 = vpop.f32.mrf.mxu1 }
  0xf8   : > { %718 = vst.msk [vmem:[%s1176_s29 + $0x30] sm:$0xf] %vm705_vm3, %v932_v44  ;;  %734 = vst.msk [vmem:[%s1176_s29 + $0x70] sm:$0xf] %vm705_vm3, %v948_v45  ;;  %v935_v50 = vpack.c.bf16 %v510_v46, %v510_v46  ;;  %v502_v52 = vadd.f32 %v1167_v22, %v501_v48  ;;  %v566_v53 = vadd.f32 %v1167_v22, %v565_v49 }
  0xf9   : > { %v951_v51 = vpack.c.bf16 %v574_v47, %v574_v47 }
  0xfa   : > { %721 = vst.msk [vmem:[%s1176_s29 + $0x3c] sm:$0xf] %vm705_vm3, %v935_v50  ;;  %v933_v54 = vpack.c.bf16 %v502_v52, %v502_v52  ;;  %v949_v55 = vpack.c.bf16 %v566_v53, %v566_v53 }
  0xfb   : > { %737 = vst.msk [vmem:[%s1176_s29 + $0x7c] sm:$0xf] %vm705_vm3, %v951_v51 }
  0xfc   : > { %719 = vst.msk [vmem:[%s1176_s29 + $0x34] sm:$0xf] %vm705_vm3, %v933_v54  ;;  %735 = vst.msk [vmem:[%s1176_s29 + $0x74] sm:$0xf] %vm705_vm3, %v949_v55 }
  0xfd PF: > { %s13_s14 = sadd.s32 1, %s1075_s14   ;;  %s1285_s12 = smov %s1071_s13 }
  0xfe   : > { %p10_p5 = scmp.ge.s32.totalorder %s13_s14, 10   ;;  %s1286_s13 = smov %s1288_s15 }
 0x100   :  { %12 = sbr.rel (!%p10_p5) target bundleno = 2 (0x2), region = 68 }

</bundles_post_ra>
